<compile_context>
chip_gen: v6e
topology: v6e:2x2x1
jax: 0.10.0
libtpu: 0.0.40
codegen_flags: <defaults>
</compile_context>

<pallas_src>
import functools

import jax
import jax.numpy as jnp
from jax import lax
from jax.experimental import pallas as pl
from jax.experimental.pallas import tpu as pltpu


def _round_up(x, m):
    return (x + m - 1) // m * m


def _cross_attn_kernel(f_ref, e_ref, wq_ref, bq_ref, wkv_ref, bkv_ref, o_ref,
                       *, scale, n_valid, e_pad):
    # Q = features_tile @ Wq + bq                      : [TM, E_pad]
    q = jnp.dot(f_ref[...], wq_ref[...],
                preferred_element_type=jnp.float32) + bq_ref[...]

    # Fused K/V projection: [N_pad, 2*E_pad] (one MXU pass instead of two)
    kv = jnp.dot(e_ref[...], wkv_ref[...],
                 preferred_element_type=jnp.float32) + bkv_ref[...]
    k = kv[:, :e_pad]        # lane-aligned static slices (e_pad % 128 == 0)
    v = kv[:, e_pad:]

    # scores = Q @ K^T * scale, contracting last dims directly (no transpose)
    s = lax.dot_general(q, k,
                        dimension_numbers=(((1,), (1,)), ((), ())),
                        preferred_element_type=jnp.float32) * scale

    # Mask padded key columns so they get zero softmax weight.
    col = lax.broadcasted_iota(jnp.int32, s.shape, 1)
    s = jnp.where(col < n_valid, s, jnp.float32(-1e30))

    # Numerically stable softmax in f32.
    m = jnp.max(s, axis=-1, keepdims=True)
    p = jnp.exp(s - m)
    denom = jnp.sum(p, axis=-1, keepdims=True)

    # refined = softmax(s) @ V ; fold the 1/denom into the final store.
    acc = jnp.dot(p, v, preferred_element_type=jnp.float32)
    o_ref[...] = (acc * pl.reciprocal(denom, approx=True)).astype(o_ref.dtype)


def cross_attention_refiner(features, embeddings, wq, bq, wk, bk, wv, bv, *, tm=128):
    """features: [M, F]; embeddings: [N, E]; weights are [in, out]; biases [E]."""
    M, F = features.shape
    N, E = embeddings.shape
    scale = 1.0 / (float(E) ** 0.5)

    f32 = jnp.float32
    F_pad = _round_up(F, 128)
    E_pad = _round_up(E, 128)
    N_pad = _round_up(N, 128)
    M_pad = _round_up(M, tm)

    # ---- wrapper-side zero padding to lane/sublane-dense shapes ----
    f_p = jnp.zeros((M_pad, F_pad), f32).at[:M, :F].set(features.astype(f32))
    e_p = jnp.zeros((N_pad, E_pad), f32).at[:N, :E].set(embeddings.astype(f32))

    wq_p = jnp.zeros((F_pad, E_pad), f32).at[:F, :E].set(wq.astype(f32))
    bq_p = jnp.zeros((1, E_pad), f32).at[:, :E].set(bq.reshape(1, E).astype(f32))

    # Fuse K and V projections into a single [E_pad, 2*E_pad] weight.
    wkv_p = jnp.zeros((E_pad, 2 * E_pad), f32)
    wkv_p = wkv_p.at[:E, :E].set(wk.astype(f32))
    wkv_p = wkv_p.at[:E, E_pad:E_pad + E].set(wv.astype(f32))
    bkv_p = jnp.zeros((1, 2 * E_pad), f32)
    bkv_p = bkv_p.at[:, :E].set(bk.reshape(1, E).astype(f32))
    bkv_p = bkv_p.at[:, E_pad:E_pad + E].set(bv.reshape(1, E).astype(f32))

    grid = (M_pad // tm,)
    kernel = functools.partial(_cross_attn_kernel, scale=scale, n_valid=N, e_pad=E_pad)

    flops = (2 * M_pad * F_pad * E_pad            # Q projection
             + 2 * N_pad * E_pad * 2 * E_pad      # fused K/V projection
             + 2 * M_pad * N_pad * E_pad          # Q K^T
             + 2 * M_pad * N_pad * E_pad)         # A V
    bytes_accessed = 4 * (f_p.size + e_p.size + wq_p.size + bq_p.size
                          + wkv_p.size + bkv_p.size + M_pad * E_pad)

    out_p = pl.pallas_call(
        kernel,
        out_shape=jax.ShapeDtypeStruct((M_pad, E_pad), f32),
        grid_spec=pltpu.PrefetchScalarGridSpec(
            num_scalar_prefetch=0,
            grid=grid,
            in_specs=[
                pl.BlockSpec((tm, F_pad), lambda i: (i, 0)),          # features tile
                pl.BlockSpec((N_pad, E_pad), lambda i: (0, 0)),       # embeddings (resident)
                pl.BlockSpec((F_pad, E_pad), lambda i: (0, 0)),       # Wq
                pl.BlockSpec((1, E_pad), lambda i: (0, 0)),           # bq
                pl.BlockSpec((E_pad, 2 * E_pad), lambda i: (0, 0)),   # Wkv (fused)
                pl.BlockSpec((1, 2 * E_pad), lambda i: (0, 0)),       # bkv (fused)
            ],
            out_specs=pl.BlockSpec((tm, E_pad), lambda i: (i, 0)),
        ),
        compiler_params=pltpu.CompilerParams(
            dimension_semantics=("parallel",)),
        cost_estimate=pl.CostEstimate(
            flops=flops,
            transcendentals=M_pad * N_pad,
            bytes_accessed=bytes_accessed),
    )(f_p, e_p, wq_p, bq_p, wkv_p, bkv_p)

    # Strip padding back to the module's output shape.
    return out_p[:M, :E]


def _xavier_normal(key, shape):
    fan_in, fan_out = shape
    std = (2.0 / (fan_in + fan_out)) ** 0.5
    return jax.random.normal(key, shape, dtype=jnp.float32) * std


def _reference(features, embeddings, wq, bq, wk, bk, wv, bv):
    E = embeddings.shape[1]
    q = features @ wq + bq
    k = embeddings @ wk + bk
    v = embeddings @ wv + bv
    s = (q @ k.T) / (E ** 0.5)
    w = jax.nn.softmax(s, axis=-1)
    return w @ v


if __name__ == "__main__":
    # Small shapes consistent with the module's forward.
    M = 8              # number of feature rows
    N = 16             # number of embedding rows
    feature_dim = 32
    embedding_dim = 32

    key = jax.random.PRNGKey(0)
    kf, ke, kq, kk, kv = jax.random.split(key, 5)

    features = jax.random.normal(kf, (M, feature_dim), dtype=jnp.float32)
    embeddings = jax.random.normal(ke, (N, embedding_dim), dtype=jnp.float32)

    # Parameters in [in, out] layout (x @ W + b == PyTorch nn.Linear forward).
    wq = _xavier_normal(kq, (feature_dim, embedding_dim))
    bq = jnp.zeros((embedding_dim,), dtype=jnp.float32)
    wk = _xavier_normal(kk, (embedding_dim, embedding_dim))
    bk = jnp.zeros((embedding_dim,), dtype=jnp.float32)
    wv = _xavier_normal(kv, (embedding_dim, embedding_dim))
    bv = jnp.zeros((embedding_dim,), dtype=jnp.float32)

    out = cross_attention_refiner(features, embeddings, wq, bq, wk, bk, wv, bv)
    out = jax.block_until_ready(out)

    ref = _reference(features, embeddings, wq, bq, wk, bk, wv, bv)
    assert out.shape == (M, embedding_dim)
    # Tolerance covers the EUP approximate reciprocal used for the softmax denom.
    assert jnp.allclose(out, ref, atol=2e-3, rtol=2e-3), "mismatch vs reference"

    print("KERNEL_OK")
</pallas_src>

<mosaic_0001>
module attributes {stable_mosaic.version = 11 : i64} {
  func.func @_cross_attn_kernel(%arg0: i32, %arg1: memref<128x128xf32, #tpu.memory_space<vmem>>, %arg2: memref<128x128xf32, #tpu.memory_space<vmem>>, %arg3: memref<128x128xf32, #tpu.memory_space<vmem>>, %arg4: memref<1x128xf32, #tpu.memory_space<vmem>>, %arg5: memref<128x256xf32, #tpu.memory_space<vmem>>, %arg6: memref<1x256xf32, #tpu.memory_space<vmem>>, %arg7: memref<128x128xf32, #tpu.memory_space<vmem>>) attributes {dimension_semantics = [#tpu.dimension_semantics<parallel>], iteration_bounds = array<i64: 1>, scalar_prefetch = 0 : i64, scratch_operands = 0 : i64, tpu.core_type = #tpu.core_type<tc>, window_params = [{transform_indices = @transform_0, window_bounds = array<i64: 128, 128>}, {pipeline_mode = #tpu.pipeline_mode<synchronous>, transform_indices = @transform_1, window_bounds = array<i64: 128, 128>}, {pipeline_mode = #tpu.pipeline_mode<synchronous>, transform_indices = @transform_2, window_bounds = array<i64: 128, 128>}, {pipeline_mode = #tpu.pipeline_mode<synchronous>, transform_indices = @transform_3, window_bounds = array<i64: 1, 128>}, {pipeline_mode = #tpu.pipeline_mode<synchronous>, transform_indices = @transform_4, window_bounds = array<i64: 128, 256>}, {pipeline_mode = #tpu.pipeline_mode<synchronous>, transform_indices = @transform_5, window_bounds = array<i64: 1, 256>}, {transform_indices = @transform_6, window_bounds = array<i64: 128, 128>}]} {
    %c0 = arith.constant 0 : index
    %c0_0 = arith.constant 0 : index
    %0 = vector.load %arg1[%c0, %c0_0] : memref<128x128xf32, #tpu.memory_space<vmem>>, vector<128x128xf32>
    %c0_1 = arith.constant 0 : index
    %c0_2 = arith.constant 0 : index
    %1 = vector.load %arg3[%c0_1, %c0_2] : memref<128x128xf32, #tpu.memory_space<vmem>>, vector<128x128xf32>
    %cst = arith.constant dense<0.000000e+00> : vector<128x128xf32>
    %2 = tpu.matmul %0, %1, %cst {dimension_numbers = #tpu.dot_dimension_numbers<[1], [0], [0], [1], [0, 0, 1, 1], [], []>} : vector<128x128xf32>, vector<128x128xf32>, vector<128x128xf32> -> vector<128x128xf32>
    %c0_3 = arith.constant 0 : index
    %c0_4 = arith.constant 0 : index
    %3 = vector.load %arg4[%c0_3, %c0_4] : memref<1x128xf32, #tpu.memory_space<vmem>>, vector<1x128xf32>
    %4 = vector.broadcast %3 : vector<1x128xf32> to vector<128x128xf32>
    %5 = arith.addf %2, %4 : vector<128x128xf32>
    %c0_5 = arith.constant 0 : index
    %c0_6 = arith.constant 0 : index
    %6 = vector.load %arg2[%c0_5, %c0_6] : memref<128x128xf32, #tpu.memory_space<vmem>>, vector<128x128xf32>
    %c0_7 = arith.constant 0 : index
    %c0_8 = arith.constant 0 : index
    %7 = vector.load %arg5[%c0_7, %c0_8] : memref<128x256xf32, #tpu.memory_space<vmem>>, vector<128x256xf32>
    %cst_9 = arith.constant dense<0.000000e+00> : vector<128x256xf32>
    %8 = tpu.matmul %6, %7, %cst_9 {dimension_numbers = #tpu.dot_dimension_numbers<[1], [0], [0], [1], [0, 0, 1, 1], [], []>} : vector<128x128xf32>, vector<128x256xf32>, vector<128x256xf32> -> vector<128x256xf32>
    %c0_10 = arith.constant 0 : index
    %c0_11 = arith.constant 0 : index
    %9 = vector.load %arg6[%c0_10, %c0_11] : memref<1x256xf32, #tpu.memory_space<vmem>>, vector<1x256xf32>
    %10 = vector.broadcast %9 : vector<1x256xf32> to vector<128x256xf32>
    %11 = arith.addf %8, %10 : vector<128x256xf32>
    %12 = vector.extract_strided_slice %11 {offsets = [0, 0], sizes = [128, 128], strides = [1, 1]} : vector<128x256xf32> to vector<128x128xf32>
    %13 = vector.extract_strided_slice %11 {offsets = [0, 128], sizes = [128, 128], strides = [1, 1]} : vector<128x256xf32> to vector<128x128xf32>
    %cst_12 = arith.constant dense<0.000000e+00> : vector<128x128xf32>
    %14 = tpu.matmul %5, %12, %cst_12 {dimension_numbers = #tpu.dot_dimension_numbers<[1], [1], [0], [0], [0, 0, 1, 0], [], []>} : vector<128x128xf32>, vector<128x128xf32>, vector<128x128xf32> -> vector<128x128xf32>
    %cst_13 = arith.constant 0.176776692 : f32
    %15 = vector.broadcast %cst_13 : f32 to vector<128x128xf32>
    %16 = arith.mulf %14, %15 : vector<128x128xf32>
    %17 = tpu.iota {dimensions = array<i32: 1>} : vector<128x128xi32>
    %c16_i32 = arith.constant 16 : i32
    %18 = vector.broadcast %c16_i32 : i32 to vector<128x128xi32>
    %19 = arith.cmpi slt, %17, %18 : vector<128x128xi32>
    %cst_14 = arith.constant -1.000000e+30 : f32
    %20 = vector.broadcast %cst_14 : f32 to vector<128x128xf32>
    %21 = arith.select %19, %16, %20 : vector<128x128xi1>, vector<128x128xf32>
    %cst_15 = arith.constant dense<0xFF800000> : vector<128xf32>
    %22 = vector.multi_reduction <maximumf>, %21, %cst_15 [1] : vector<128x128xf32> to vector<128xf32>
    %23 = vector.shape_cast %22 : vector<128xf32> to vector<128x1xf32>
    %24 = vector.broadcast %23 : vector<128x1xf32> to vector<128x128xf32>
    %25 = arith.subf %21, %24 : vector<128x128xf32>
    %26 = math.exp %25 : vector<128x128xf32>
    %cst_16 = arith.constant dense<0.000000e+00> : vector<128xf32>
    %27 = vector.multi_reduction <add>, %26, %cst_16 [1] : vector<128x128xf32> to vector<128xf32>
    %28 = vector.shape_cast %27 : vector<128xf32> to vector<128x1xf32>
    %cst_17 = arith.constant dense<0.000000e+00> : vector<128x128xf32>
    %29 = tpu.matmul %26, %13, %cst_17 {dimension_numbers = #tpu.dot_dimension_numbers<[1], [0], [0], [1], [0, 0, 1, 1], [], []>} : vector<128x128xf32>, vector<128x128xf32>, vector<128x128xf32> -> vector<128x128xf32>
    %30 = tpu.reciprocal %28 {approx = true} : vector<128x1xf32> -> vector<128x1xf32>
    %31 = vector.broadcast %30 : vector<128x1xf32> to vector<128x128xf32>
    %32 = arith.mulf %29, %31 : vector<128x128xf32>
    %c0_18 = arith.constant 0 : index
    %c0_19 = arith.constant 0 : index
    %33 = vector.load %arg7[%c0_18, %c0_19] : memref<128x128xf32, #tpu.memory_space<vmem>>, vector<128x128xf32>
    tpu.vector_store %arg7[%c0_18, %c0_19], %32 {strides = array<i32>} : memref<128x128xf32, #tpu.memory_space<vmem>>, vector<128x128xf32>,
    return
  }
  func.func @transform_0(%arg0: i32) -> (i32, i32) {
    %c0_i32 = arith.constant 0 : i32
    %c0_i32_0 = arith.constant 0 : i32
    return %arg0, %c0_i32 : i32, i32
  }
  func.func @transform_1(%arg0: i32) -> (i32, i32) {
    %c0_i32 = arith.constant 0 : i32
    %c0_i32_0 = arith.constant 0 : i32
    %c0_i32_1 = arith.constant 0 : i32
    return %c0_i32, %c0_i32_0 : i32, i32
  }
  func.func @transform_2(%arg0: i32) -> (i32, i32) {
    %c0_i32 = arith.constant 0 : i32
    %c0_i32_0 = arith.constant 0 : i32
    %c0_i32_1 = arith.constant 0 : i32
    return %c0_i32, %c0_i32_0 : i32, i32
  }
  func.func @transform_3(%arg0: i32) -> (i32, i32) {
    %c0_i32 = arith.constant 0 : i32
    %c0_i32_0 = arith.constant 0 : i32
    %c0_i32_1 = arith.constant 0 : i32
    return %c0_i32, %c0_i32_0 : i32, i32
  }
  func.func @transform_4(%arg0: i32) -> (i32, i32) {
    %c0_i32 = arith.constant 0 : i32
    %c0_i32_0 = arith.constant 0 : i32
    %c0_i32_1 = arith.constant 0 : i32
    return %c0_i32, %c0_i32_0 : i32, i32
  }
  func.func @transform_5(%arg0: i32) -> (i32, i32) {
    %c0_i32 = arith.constant 0 : i32
    %c0_i32_0 = arith.constant 0 : i32
    %c0_i32_1 = arith.constant 0 : i32
    return %c0_i32, %c0_i32_0 : i32, i32
  }
  func.func @transform_6(%arg0: i32) -> (i32, i32) {
    %c0_i32 = arith.constant 0 : i32
    %c0_i32_0 = arith.constant 0 : i32
    return %arg0, %c0_i32 : i32, i32
  }
}

</mosaic_0001>

<bundles_post_ra>
// kernel: tpu_custom_call.1
= control target key start
LH: loop header
LB: loop body
LE: loop exit
PB: predicated region body
PF: predicated region fallthrough
CT: control target
= control target key end

     0   :  { %11 = vsyncpa [#allocation3], 0  ;;  %s1702_s0 = inlined_call_operand.hbm [shape: f32[128,128], index: 0, kind: input, shape index: {}]   ;;  %s1703_s1 = inlined_call_operand.hbm [shape: f32[128,128], index: 1, kind: input, shape index: {}]   ;;  %s1704_s2 = inlined_call_operand.hbm [shape: f32[128,128], index: 2, kind: input, shape index: {}]   ;;  %s1705_s3 = inlined_call_operand.vmem [shape: f32[1,128], index: 3, kind: input, shape index: {}]   ;;  %s1706_s4 = inlined_call_operand.hbm [shape: f32[128,256], index: 4, kind: input, shape index: {}]   ;;  %s1707_s5 = inlined_call_operand.vmem [shape: f32[1,256], index: 5, kind: input, shape index: {}]   ;;  %s1708_s6 = inlined_call_operand.hbm [shape: f32[128,128], index: 6, kind: output, shape index: {}]  }
   0x1   :  { %12 = vsyncpa [#allocation6], 0 }
   0x2   :  { %13 = vsyncpa [#allocation9], 0 }
   0x3   :  { %14 = vsyncpa [#allocation4], 0  ;;  %s1435_s21 = smov [#allocation5]   ;;  %s1436_s23 = smov [#allocation2]  }
   0x4   :  { %s32_s22 = sshll.u32 %s1435_s21, 4  ;;  %s20_s24 = sshll.u32 %s1436_s23, 4  ;;  %s33_s22 = int_to_ptr.vmem [resolvable:$true] %s32_s22  ;;  %s21_s24 = int_to_ptr.vmem [resolvable:$true] %s20_s24 }
   0x5   :  { %s1335_s25 = scalar_lea.vmem %s33_s22, 2048  ;;  %p1340_p1 = scmp.lt.s32.totalorder %s33_s22, %s33_s22 }
   0x6   :  { %p1336_p0 = scmp.ne.s32.totalorder %s33_s22, %s1335_s25  ;;  %p1341_p2 = scmp.lt.s32.totalorder %s1335_s25, %s1335_s25 }
   0x8   :  { %p1342_p3 = por %p1341_p2, %p1340_p1 }
   0xa   :  { %p1343_p4 = pnand %p1342_p3, %p1336_p0 }
   0xc   :  { %1346 = shalt.err (!%p1343_p4)
}
   0xd   :  { %s1437_s26 = smov 128   ;;  %s1438_s27 = smov 8  }
   0xe   :  { %38 = dma.hbm_to_vmem [thread:$0]  %s1703_s1, 2048, %s33_s22, [#allocation6], %s1437_s26, %s1437_s26, %s1438_s27  }
   0xf   :  { %s1355_s30 = scalar_lea.vmem %s21_s24, 2048  ;;  %p1360_p6 = scmp.lt.s32.totalorder %s21_s24, %s21_s24 }
  0x10   :  { %p1356_p5 = scmp.ne.s32.totalorder %s21_s24, %s1355_s30  ;;  %p1361_p7 = scmp.lt.s32.totalorder %s1355_s30, %s1355_s30 }
  0x12   :  { %p1362_p8 = por %p1361_p7, %p1360_p6 }
  0x14   :  { %p1363_p9 = pnand %p1362_p8, %p1356_p5 }
  0x16   :  { %1366 = shalt.err (!%p1363_p9)
}
  0x17   :  { %26 = dma.hbm_to_vmem [thread:$0]  %s1702_s0, 2048, %s21_s24, [#allocation3], %s1437_s26, %s1437_s26, %s1438_s27  }
  0x18   :  { %s1439_s9 = smov [#allocation7]   ;;  %s1440_s11 = smov [#allocation8]  }
  0x19   :  { %s44_s10 = sshll.u32 %s1439_s9, 4  ;;  %s58_s12 = sshll.u32 %s1440_s11, 4  ;;  %s45_s10 = int_to_ptr.vmem [resolvable:$true] %s44_s10  ;;  %s59_s12 = int_to_ptr.vmem [resolvable:$true] %s58_s12 }
  0x1a   :  { %s1375_s1 = scalar_lea.vmem %s45_s10, 2048  ;;  %p1380_p11 = scmp.lt.s32.totalorder %s45_s10, %s45_s10 }
  0x1b   :  { %p1376_p10 = scmp.ne.s32.totalorder %s45_s10, %s1375_s1  ;;  %p1381_p12 = scmp.lt.s32.totalorder %s1375_s1, %s1375_s1 }
  0x1d   :  { %p1382_p13 = por %p1381_p12, %p1380_p11 }
  0x1f   :  { %p1383_p0 = pnand %p1382_p13, %p1376_p10 }
  0x21   :  { %1386 = shalt.err (!%p1383_p0)
}
  0x22   :  { %50 = dma.hbm_to_vmem [thread:$0]  %s1704_s2, 2048, %s45_s10, [#allocation6], %s1437_s26, %s1437_s26, %s1438_s27  }
  0x23   :  { %s1395_s0 = scalar_lea.vmem %s59_s12, 4096  ;;  %p1400_p2 = scmp.lt.s32.totalorder %s59_s12, %s59_s12 }
  0x24   :  { %p1396_p1 = scmp.ne.s32.totalorder %s59_s12, %s1395_s0  ;;  %p1401_p3 = scmp.lt.s32.totalorder %s1395_s0, %s1395_s0 }
  0x26   :  { %p1402_p4 = por %p1401_p3, %p1400_p2 }
  0x28   :  { %p1403_p5 = pnand %p1402_p4, %p1396_p1 }
  0x2a   :  { %1406 = shalt.err (!%p1403_p5)
}
  0x2b   :  { %s1441_s15 = smov 256   ;;  %s1442_s16 = smov 16  }
  0x2c   :  { %64 = dma.hbm_to_vmem [thread:$0]  %s1706_s4, 4096, %s59_s12, [#allocation9], %s1441_s15, %s1441_s15, %s1442_s16  }
  0x2d   :  { %1427 = dma.done.wait [#allocation3], 2048  }
  0x2e   :  { %1428 = vsyncadd [#allocation3], 4294965248 }
  0x2f   :  { %1429 = dma.done.wait [#allocation6], 4096  }
  0x30   :  { %1430 = vsyncadd [#allocation6], 4294963200 }
  0x31   :  { %1431 = dma.done.wait [#allocation9], 4096  }
  0x32   :  { %1432 = vsyncadd [#allocation9], 4294963200  ;;  %v1443_v0 = vmov 0.0   ;;  %v310_v1 = vld [vmem:[#allocation8 + $0xf8] sm:$0xff]  ;;  %v309_v2 = vld [vmem:[#allocation8 + $0xf0] sm:$0xff] }
  0x33   :  { %387 = vmatprep.mubr.f32.mxu1 %v1443_v0  ;;  %v308_v3 = vld [vmem:[#allocation8 + $0xe8] sm:$0xff]  ;;  %323 = vmatprep.subr.mxu1 %v310_v1  ;;  %v307_v4 = vld [vmem:[#allocation8 + $0xe0] sm:$0xff]  ;;  %v306_v5 = vld [vmem:[#allocation8 + $0xd8] sm:$0xff] }
  0x34   :  { %324 = vmatpush1.msra.mxu1 %v309_v2  ;;  %v305_v6 = vld [vmem:[#allocation8 + $0xd0] sm:$0xff]  ;;  %v304_v7 = vld [vmem:[#allocation8 + $0xc8] sm:$0xff]  ;;  %v303_v8 = vld [vmem:[#allocation8 + $0xc0] sm:$0xff] }
  0x35   :  { %325 = vmatprep.subr.mxu1 %v308_v3  ;;  %v302_v9 = vld [vmem:[#allocation8 + $0xb8] sm:$0xff]  ;;  %v301_v10 = vld [vmem:[#allocation8 + $0xb0] sm:$0xff]  ;;  %v300_v11 = vld [vmem:[#allocation8 + $0xa8] sm:$0xff] }
  0x36   :  { %326 = vmatpush1.msra.mxu1 %v307_v4  ;;  %v299_v12 = vld [vmem:[#allocation8 + $0xa0] sm:$0xff]  ;;  %v298_v13 = vld [vmem:[#allocation8 + $0x98] sm:$0xff]  ;;  %v297_v14 = vld [vmem:[#allocation8 + $0x90] sm:$0xff] }
  0x37   :  { %327 = vmatprep.subr.mxu1 %v306_v5  ;;  %v296_v15 = vld [vmem:[#allocation8 + $0x88] sm:$0xff]  ;;  %v295_v16 = vld [vmem:[#allocation8 + $0x80] sm:$0xff]  ;;  %v294_v17 = vld [vmem:[#allocation8 + $0x78] sm:$0xff] }
  0x38   :  { %328 = vmatpush1.msra.mxu1 %v305_v6  ;;  %v293_v18 = vld [vmem:[#allocation8 + $0x70] sm:$0xff]  ;;  %v292_v19 = vld [vmem:[#allocation8 + $0x68] sm:$0xff]  ;;  %v110_v20 = vld [vmem:[#allocation7 + $0x78] sm:$0xff] }
  0x39   :  { %329 = vmatprep.subr.mxu1 %v304_v7  ;;  %v109_v21 = vld [vmem:[#allocation7 + $0x70] sm:$0xff]  ;;  %v291_v22 = vld [vmem:[#allocation8 + $0x60] sm:$0xff]  ;;  %1085 = vmatprep.subr.mxu0 %v110_v20  ;;  %v290_v23 = vld [vmem:[#allocation8 + $0x58] sm:$0xff] }
  0x3a   :  { %330 = vmatpush1.msra.mxu1 %v303_v8  ;;  %1086 = vmatpush3.msra.mxu0 %v110_v20  ;;  %v108_v24 = vld [vmem:[#allocation7 + $0x68] sm:$0xff]  ;;  %v289_v25 = vld [vmem:[#allocation8 + $0x50] sm:$0xff]  ;;  %v107_v27 = vld [vmem:[#allocation7 + $0x60] sm:$0xff] }
  0x3b   :  { %331 = vmatprep.subr.mxu1 %v302_v9  ;;  %1087 = vmatprep.subr.mxu0 %v109_v21  ;;  %v288_v26 = vld [vmem:[#allocation8 + $0x48] sm:$0xff]  ;;  %v287_v28 = vld [vmem:[#allocation8 + $0x40] sm:$0xff]  ;;  %v286_v29 = vld [vmem:[#allocation8 + $0x38] sm:$0xff] }
  0x3c   :  { %332 = vmatpush1.msra.mxu1 %v301_v10  ;;  %1088 = vmatpush3.msra.mxu0 %v109_v21  ;;  %v106_v30 = vld [vmem:[#allocation7 + $0x58] sm:$0xff]  ;;  %v285_v31 = vld [vmem:[#allocation8 + $0x30] sm:$0xff]  ;;  %v284_v32 = vld [vmem:[#allocation8 + $0x28] sm:$0xff] }
  0x3d   :  { %333 = vmatprep.subr.mxu1 %v300_v11  ;;  %1089 = vmatprep.subr.mxu0 %v108_v24  ;;  %v105_v33 = vld [vmem:[#allocation7 + $0x50] sm:$0xff]  ;;  %v283_v34 = vld [vmem:[#allocation8 + $0x20] sm:$0xff]  ;;  %v282_v35 = vld [vmem:[#allocation8 + $0x18] sm:$0xff] }
  0x3e   :  { %334 = vmatpush1.msra.mxu1 %v299_v12  ;;  %1090 = vmatpush3.msra.mxu0 %v108_v24  ;;  %v104_v36 = vld [vmem:[#allocation7 + $0x48] sm:$0xff]  ;;  %v281_v37 = vld [vmem:[#allocation8 + $0x10] sm:$0xff]  ;;  %v103_v39 = vld [vmem:[#allocation7 + $0x40] sm:$0xff] }
  0x3f   :  { %335 = vmatprep.subr.mxu1 %v298_v13  ;;  %1091 = vmatprep.subr.mxu0 %v107_v27  ;;  %v280_v38 = vld [vmem:[#allocation8 + $0x8] sm:$0xff]  ;;  %v279_v40 = vld [vmem:[#allocation8] sm:$0xff]  ;;  %v102_v42 = vld [vmem:[#allocation7 + $0x38] sm:$0xff] }
  0x40   :  { %336 = vmatpush1.msra.mxu1 %v297_v14  ;;  %1092 = vmatpush3.msra.mxu0 %v107_v27  ;;  %v263_v41 = vld [vmem:[#allocation5] sm:$0xff]  ;;  %v101_v43 = vld [vmem:[#allocation7 + $0x30] sm:$0xff]  ;;  %v264_v45 = vld [vmem:[#allocation5 + $0x8] sm:$0xff] }
  0x41   :  { %337 = vmatprep.subr.mxu1 %v296_v15  ;;  %1093 = vmatprep.subr.mxu0 %v106_v30  ;;  %v79_v44 = vld [vmem:[#allocation2] sm:$0xff]  ;;  %v100_v46 = vld [vmem:[#allocation7 + $0x28] sm:$0xff]  ;;  %v265_v48 = vld [vmem:[#allocation5 + $0x10] sm:$0xff] }
  0x42   :  { %338 = vmatpush1.msra.mxu1 %v295_v16  ;;  %1094 = vmatpush3.msra.mxu0 %v106_v30  ;;  %v99_v47 = vld [vmem:[#allocation7 + $0x20] sm:$0xff]  ;;  %v98_v49 = vld [vmem:[#allocation7 + $0x18] sm:$0xff]  ;;  %v97_v50 = vld [vmem:[#allocation7 + $0x10] sm:$0xff] }
  0x43   :  { %339 = vmatprep.subr.mxu1 %v294_v17  ;;  %1095 = vmatprep.subr.mxu0 %v105_v33  ;;  %v266_v51 = vld [vmem:[#allocation5 + $0x18] sm:$0xff]  ;;  %v96_v52 = vld [vmem:[#allocation7 + $0x8] sm:$0xff]  ;;  %v95_v53 = vld [vmem:[#allocation7] sm:$0xff] }
  0x44   :  { %340 = vmatpush1.msra.mxu1 %v293_v18  ;;  %1096 = vmatpush3.msra.mxu0 %v105_v33  ;;  %v267_v54 = vld [vmem:[#allocation5 + $0x20] sm:$0xff]  ;;  %v80_v55 = vld [vmem:[#allocation2 + $0x8] sm:$0xff]  ;;  %v81_v56 = vld [vmem:[#allocation2 + $0x10] sm:$0xff] }
  0x45   :  { %341 = vmatprep.subr.mxu1 %v292_v19  ;;  %1097 = vmatprep.subr.mxu0 %v104_v36  ;;  %v268_v57 = vld [vmem:[#allocation5 + $0x28] sm:$0xff]  ;;  %v82_v58 = vld [vmem:[#allocation2 + $0x18] sm:$0xff]  ;;  %v83_v59 = vld [vmem:[#allocation2 + $0x20] sm:$0xff] }
  0x46   :  { %342 = vmatpush1.msra.mxu1 %v291_v22  ;;  %1098 = vmatpush3.msra.mxu0 %v104_v36  ;;  %v269_v60 = vld [vmem:[#allocation5 + $0x30] sm:$0xff]  ;;  %v84_v61 = vld [vmem:[#allocation2 + $0x28] sm:$0xff]  ;;  %v270_v63 = vld [vmem:[#allocation5 + $0x38] sm:$0xff] }
  0x47   :  { %343 = vmatprep.subr.mxu1 %v290_v23  ;;  %1099 = vmatprep.subr.mxu0 %v103_v39  ;;  %v85_v62 = vld [vmem:[#allocation2 + $0x30] sm:$0xff]  ;;  %v86_v1 = vld [vmem:[#allocation2 + $0x38] sm:$0xff]  ;;  %v87_v2 = vld [vmem:[#allocation2 + $0x40] sm:$0xff] }
  0x48   :  { %344 = vmatpush1.msra.mxu1 %v289_v25  ;;  %1100 = vmatpush3.msra.mxu0 %v103_v39  ;;  %v271_v3 = vld [vmem:[#allocation5 + $0x40] sm:$0xff]  ;;  %v88_v4 = vld [vmem:[#allocation2 + $0x48] sm:$0xff]  ;;  %v89_v5 = vld [vmem:[#allocation2 + $0x50] sm:$0xff] }
  0x49   :  { %345 = vmatprep.subr.mxu1 %v288_v26  ;;  %1101 = vmatprep.subr.mxu0 %v102_v42  ;;  %v272_v6 = vld [vmem:[#allocation5 + $0x48] sm:$0xff]  ;;  %v90_v7 = vld [vmem:[#allocation2 + $0x58] sm:$0xff]  ;;  %v91_v8 = vld [vmem:[#allocation2 + $0x60] sm:$0xff] }
  0x4a   :  { %346 = vmatpush1.msra.mxu1 %v287_v28  ;;  %1102 = vmatpush3.msra.mxu0 %v102_v42  ;;  %v273_v9 = vld [vmem:[#allocation5 + $0x50] sm:$0xff]  ;;  %v92_v10 = vld [vmem:[#allocation2 + $0x68] sm:$0xff]  ;;  %v274_v12 = vld [vmem:[#allocation5 + $0x58] sm:$0xff] }
  0x4b   :  { %347 = vmatprep.subr.mxu1 %v286_v29  ;;  %1103 = vmatprep.subr.mxu0 %v101_v43  ;;  %v93_v11 = vld [vmem:[#allocation2 + $0x70] sm:$0xff]  ;;  %v94_v13 = vld [vmem:[#allocation2 + $0x78] sm:$0xff]  ;;  %v275_v14 = vld [vmem:[#allocation5 + $0x60] sm:$0xff] }
  0x4c   :  { %348 = vmatpush1.msra.mxu1 %v285_v31  ;;  %1117 = vmatprep.mubr.f32.mxu0 %v79_v44  ;;  %v276_v15 = vld [vmem:[#allocation5 + $0x68] sm:$0xff]  ;;  %v277_v16 = vld [vmem:[#allocation5 + $0x70] sm:$0xff]  ;;  %v278_v17 = vld [vmem:[#allocation5 + $0x78] sm:$0xff] }
  0x4d   :  { %349 = vmatprep.subr.mxu1 %v284_v32  ;;  %1104 = vmatpush3.msra.mxu0 %v101_v43 }
  0x4e   :  { %350 = vmatpush1.msra.mxu1 %v283_v34  ;;  %1105 = vmatprep.subr.mxu0 %v100_v46 }
  0x4f   :  { %351 = vmatprep.subr.mxu1 %v282_v35  ;;  %1106 = vmatpush3.msra.mxu0 %v100_v46  ;;  %v313_v46 = vlaneseq }
  0x50   :  { %352 = vmatpush1.msra.mxu1 %v281_v37  ;;  %1107 = vmatprep.subr.mxu0 %v99_v47 }
  0x51   :  { %353 = vmatprep.subr.mxu1 %v280_v38  ;;  %1108 = vmatpush3.msra.mxu0 %v99_v47 }
  0x52   :  { %354 = vmatpush1.msra.mxu1 %v279_v40  ;;  %1109 = vmatprep.subr.mxu0 %v98_v49 }
  0x53   :  { %388 = vmatmul.mubr.f32.vlgmr.msra.gmra.mxu1 %v263_v41  ;;  %1110 = vmatpush3.msra.mxu0 %v98_v49  ;;  %v314_v49 = vshrl.u32 %v313_v46, 7 }
  0x54   :  { %393 = vmatprep.mubr.f32.mxu1 %v1443_v0  ;;  %1111 = vmatprep.subr.mxu0 %v97_v50 }
  0x55   :  { %1112 = vmatpush3.msra.mxu0 %v97_v50 }
  0x56   :  { %1113 = vmatprep.subr.mxu0 %v96_v52 }
  0x57   :  { %394 = vmatmul.mubr.f32.gmra.mxu1 %v264_v45  ;;  %1114 = vmatpush3.msra.mxu0 %v96_v52  ;;  %v315_v52 = vsub.s32 0, %v314_v49 }
  0x58   :  { %399 = vmatprep.mubr.f32.mxu1 %v1443_v0  ;;  %1115 = vmatprep.subr.mxu0 %v95_v53 }
  0x59   :  { %1116 = vmatpush3.msra.mxu0 %v95_v53  ;;  %v311_v53 = vld [vmem:[%s1707_s5] sm:$0x3]  ;;  %s1444_s5 = smov [#allocation10]  }
  0x5a   :  { %1118 = vmatmul.mubr.f32.vlgmr.msra.gmra.mxu0 %v80_v55  ;;  %v319_v55 = vsub.s32 1, %v314_v49  ;;  %s974_s20 = sshll.u32 %s1444_s5, 4  ;;  %s975_s20 = int_to_ptr.vmem [resolvable:$true] %s974_s20 }
  0x5b   :  { %400 = vmatmul.mubr.f32.gmra.mxu1 %v265_v48  ;;  %1120 = vmatprep.mubr.f32.mxu0 %v81_v56  ;;  %s1407_s21 = scalar_lea.vmem %s975_s20, 2048  ;;  %p1412_p7 = scmp.lt.s32.totalorder %s975_s20, %s975_s20 }
  0x5c   :  { %405 = vmatprep.mubr.f32.mxu1 %v1443_v0  ;;  %p1408_p6 = scmp.ne.s32.totalorder %s975_s20, %s1407_s21  ;;  %p1413_p8 = scmp.lt.s32.totalorder %s1407_s21, %s1407_s21 }
  0x5e   :  { %1121 = vmatmul.mubr.f32.gmra.mxu0 %v82_v58  ;;  %p1414_p9 = por %p1413_p8, %p1412_p7 }
  0x5f   :  { %406 = vmatmul.mubr.f32.gmra.mxu1 %v266_v51  ;;  %1123 = vmatprep.mubr.f32.mxu0 %v83_v59  ;;  %v1566_v59 = vrot.slane %v311_v53, %v319_v55 }
  0x60   :  { %411 = vmatprep.mubr.f32.mxu1 %v1443_v0  ;;  %p1415_p10 = pnand %p1414_p9, %p1408_p6 }
  0x62   :  { %1124 = vmatmul.mubr.f32.gmra.mxu0 %v84_v61 }
  0x63   :  { %412 = vmatmul.mubr.f32.gmra.mxu1 %v267_v54  ;;  %1126 = vmatprep.mubr.f32.mxu0 %v85_v62 }
  0x64   :  { %417 = vmatprep.mubr.f32.mxu1 %v1443_v0 }
  0x66   :  { %1127 = vmatmul.mubr.f32.gmra.mxu0 %v86_v1 }
  0x67   :  { %418 = vmatmul.mubr.f32.gmra.mxu1 %v268_v57  ;;  %1129 = vmatprep.mubr.f32.mxu0 %v87_v2  ;;  %v1564_v57 = vrot.slane %v311_v53, %v315_v52 }
  0x68   :  { %423 = vmatprep.mubr.f32.mxu1 %v1443_v0 }
  0x6a   :  { %1130 = vmatmul.mubr.f32.gmra.mxu0 %v88_v4 }
  0x6b   :  { %424 = vmatmul.mubr.f32.gmra.mxu1 %v269_v60  ;;  %1132 = vmatprep.mubr.f32.mxu0 %v89_v5 }
  0x6c   :  { %429 = vmatprep.mubr.f32.mxu1 %v1443_v0 }
  0x6e   :  { %1133 = vmatmul.mubr.f32.gmra.mxu0 %v90_v7 }
  0x6f   :  { %430 = vmatmul.mubr.f32.gmra.mxu1 %v270_v63  ;;  %1135 = vmatprep.mubr.f32.mxu0 %v91_v8 }
  0x70   :  { %435 = vmatprep.mubr.f32.mxu1 %v1443_v0 }
  0x72   :  { %1136 = vmatmul.mubr.f32.gmra.mxu0 %v92_v10 }
  0x73   :  { %436 = vmatmul.mubr.f32.gmra.mxu1 %v271_v3  ;;  %1138 = vmatprep.mubr.f32.mxu0 %v93_v11 }
  0x74   :  { %441 = vmatprep.mubr.f32.mxu1 %v1443_v0 }
  0x76   :  { %1139 = vmatmul.mubr.f32.gmra.mxu0 %v94_v13 }
  0x77   :  { %442 = vmatmul.mubr.f32.gmra.mxu1 %v272_v6 }
  0x78   :  { %447 = vmatprep.mubr.f32.mxu1 %v1443_v0 }
  0x7b   :  { %448 = vmatmul.mubr.f32.gmra.mxu1 %v273_v9 }
  0x7c   :  { %453 = vmatprep.mubr.f32.mxu1 %v1443_v0 }
  0x7f   :  { %454 = vmatmul.mubr.f32.gmra.mxu1 %v274_v12 }
  0x80   :  { %459 = vmatprep.mubr.f32.mxu1 %v1443_v0 }
  0x83   :  { %460 = vmatmul.mubr.f32.gmra.mxu1 %v275_v14 }
  0x84   :  { %465 = vmatprep.mubr.f32.mxu1 %v1443_v0 }
  0x87   :  { %466 = vmatmul.mubr.f32.gmra.mxu1 %v276_v15 }
  0x88   :  { %471 = vmatprep.mubr.f32.mxu1 %v1443_v0 }
  0x8b   :  { %472 = vmatmul.mubr.f32.gmra.mxu1 %v277_v16 }
  0x8c   :  { %477 = vmatprep.mubr.f32.mxu1 %v1443_v0  ;;  %v1536_v0 = vld [vmem:[%s1705_s3] ss:$0 sm:$0xff] }
  0x8f   :  { %478 = vmatmul.mubr.f32.gmra.mxu1 %v278_v17 }
 0x113   :  { %v1517_v18 = vpop.f32.mrf.mxu1 }
 0x115   :  { %v1519_v19 = vpop.f32.mrf.mxu1 }
 0x117   :  { %v1521_v20 = vpop.f32.mrf.mxu1 }
 0x119   :  { %v1523_v21 = vpop.f32.mrf.mxu1 }
 0x11a   :  { %v1119_v27 = vpop.f32.mrf.mxu0 }
 0x11b   :  { %v1525_v22 = vpop.f32.mrf.mxu1  ;;  %v1541_v28 = vadd.f32 %v1119_v27, %v1536_v0 }
 0x11c   :  { %v184_v30 = vpop.f32.mrf.mxu0 }
 0x11d   :  { %v1527_v23 = vpop.f32.mrf.mxu1  ;;  %v185_v31 = vadd.f32 %v1536_v0, %v184_v30 }
 0x11e   :  { %v404_v30 = vadd.f32 %v1527_v23, %v1566_v59 }
 0x11f   :  { %v1529_v24 = vpop.f32.mrf.mxu1  ;;  %1173 = vmatprep.mubr.f32.mxu0 %v185_v31 }
 0x121   :  { %v1531_v25 = vpop.f32.mrf.mxu1 }
 0x122   :  { %v410_v17 = vadd.f32 %v1531_v25, %v1566_v59  ;;  %v392_v25 = vadd.f32 %v1519_v19, %v1566_v59 }
 0x123   :  { %v1538_v26 = vpop.f32.mrf.mxu1 }
 0x124   :  { %v414_v19 = vadd.f32 %v1538_v26, %v1564_v57 }
 0x125   :  { %v1543_v29 = vpop.f32.mrf.mxu1 }
 0x126   :  { %v416_v16 = vadd.f32 %v1543_v29, %v1566_v59  ;;  %v398_v29 = vadd.f32 %v1523_v21, %v1566_v59 }
 0x127   :  { %v1546_v32 = vpop.f32.mrf.mxu1 }
 0x128   :  { %v420_v21 = vadd.f32 %v1546_v32, %v1564_v57 }
 0x129   :  { %v1548_v33 = vpop.f32.mrf.mxu1 }
 0x12a   :  { %v422_v14 = vadd.f32 %v1548_v33, %v1566_v59  ;;  %v1122_v33 = vpop.f32.mrf.mxu0 }
 0x12b   :  { %v1550_v34 = vpop.f32.mrf.mxu1 }
 0x12c   :  { %v426_v23 = vadd.f32 %v1550_v34, %v1564_v57  ;;  %v408_v34 = vadd.f32 %v1529_v24, %v1564_v57 }
 0x12d   :  { %v1552_v35 = vpop.f32.mrf.mxu1 }
 0x12e   :  { %v428_v13 = vadd.f32 %v1552_v35, %v1566_v59  ;;  %v194_v35 = vpop.f32.mrf.mxu0 }
 0x12f   :  { %v1554_v36 = vpop.f32.mrf.mxu1 }
 0x130   :  { %v432_v31 = vadd.f32 %v1554_v36, %v1564_v57  ;;  %v1125_v36 = vpop.f32.mrf.mxu0 }
 0x131   :  { %v433_v37 = vpop.f32.mrf.mxu1 }
 0x132   :  { %v434_v11 = vadd.f32 %v433_v37, %v1566_v59  ;;  %v204_v37 = vpop.f32.mrf.mxu0 }
 0x133   :  { %v1556_v38 = vpop.f32.mrf.mxu1 }
 0x134   :  { %v438_v27 = vadd.f32 %v1556_v38, %v1564_v57  ;;  %v1128_v38 = vpop.f32.mrf.mxu0 }
 0x135   :  { %v439_v39 = vpop.f32.mrf.mxu1 }
 0x136   :  { %v440_v10 = vadd.f32 %v439_v39, %v1566_v59  ;;  %v402_v39 = vadd.f32 %v1525_v22, %v1564_v57  ;;  %v214_v32 = vpop.f32.mrf.mxu0  ;;  %v205_v22 = vadd.f32 %v1536_v0, %v204_v37 }
 0x137   :  { %v1558_v40 = vpop.f32.mrf.mxu1 }
 0x138   :  { %v444_v15 = vadd.f32 %v1558_v40, %v1564_v57  ;;  %v396_v40 = vadd.f32 %v1521_v20, %v1564_v57  ;;  %v1131_v26 = vpop.f32.mrf.mxu0  ;;  %v200_v20 = vadd.f32 %v1122_v33, %v1536_v0 }
 0x139   :  { %v445_v41 = vpop.f32.mrf.mxu1 }
 0x13a   :  { %v446_v8 = vadd.f32 %v445_v41, %v1566_v59  ;;  %v390_v41 = vadd.f32 %v1517_v18, %v1564_v57  ;;  %v224_v24 = vpop.f32.mrf.mxu0  ;;  %v215_v18 = vadd.f32 %v1536_v0, %v214_v32 }
 0x13b   :  { %v449_v42 = vpop.f32.mrf.mxu1  ;;  %v225_v49 = vadd.f32 %v1536_v0, %v224_v24 }
 0x13c   :  { %v450_v12 = vadd.f32 %v449_v42, %v1564_v57  ;;  %v195_v42 = vadd.f32 %v1536_v0, %v194_v35 }
 0x13d   :  { %v451_v43 = vpop.f32.mrf.mxu1 }
 0x13e   :  { %v452_v7 = vadd.f32 %v451_v43, %v1566_v59  ;;  %v1134_v43 = vpop.f32.mrf.mxu0 }
 0x13f   :  { %v455_v44 = vpop.f32.mrf.mxu1  ;;  %v240_v53 = vadd.f32 %v1134_v43, %v1536_v0 }
 0x140   :  { %v456_v9 = vadd.f32 %v455_v44, %v1564_v57  ;;  %v234_v44 = vpop.f32.mrf.mxu0 }
 0x141   :  { %v457_v45 = vpop.f32.mrf.mxu1 }
 0x142   :  { %v458_v5 = vadd.f32 %v457_v45, %v1566_v59  ;;  %v210_v45 = vadd.f32 %v1125_v36, %v1536_v0 }
 0x143   :  { %v461_v47 = vpop.f32.mrf.mxu1 }
 0x144   :  { %v462_v6 = vadd.f32 %v461_v47, %v1564_v57  ;;  %v1137_v47 = vpop.f32.mrf.mxu0 }
 0x145   :  { %v463_v48 = vpop.f32.mrf.mxu1 }
 0x146   :  { %v464_v4 = vadd.f32 %v463_v48, %v1566_v59  ;;  %v220_v48 = vadd.f32 %v1128_v38, %v1536_v0 }
 0x147   :  { %v467_v50 = vpop.f32.mrf.mxu1 }
 0x148   :  { %v468_v2 = vadd.f32 %v467_v50, %v1564_v57  ;;  %v230_v50 = vadd.f32 %v1131_v26, %v1536_v0 }
 0x149   :  { %v469_v51 = vpop.f32.mrf.mxu1 }
 0x14a   :  { %v470_v3 = vadd.f32 %v469_v51, %v1566_v59  ;;  %v235_v51 = vadd.f32 %v1536_v0, %v234_v44 }
 0x14b   :  { %v473_v54 = vpop.f32.mrf.mxu1 }
 0x14c   :  { %v474_v62 = vadd.f32 %v473_v54, %v1564_v57 }
 0x14d   :  { %v475_v56 = vpop.f32.mrf.mxu1 }
 0x14e   :  { %v476_v1 = vadd.f32 %v475_v56, %v1566_v59  ;;  %v250_v56 = vadd.f32 %v1137_v47, %v1536_v0 }
 0x14f   :  { %v479_v58 = vpop.f32.mrf.mxu1 }
 0x150   :  { %v480_v60 = vadd.f32 %v479_v58, %v1564_v57 }
 0x151   :  { %v481_v61 = vpop.f32.mrf.mxu1 }
 0x152   :  { %v482_v63 = vadd.f32 %v481_v61, %v1566_v59  ;;  %1141 = vmatprep.subr.mxu0 %v480_v60 }
 0x153   :  { %1142 = vmatpush3.xpose.msra.mxu0 %v480_v60  ;;  %v1633_v60 = vand.u32 127, %v313_v46 }
 0x154   :  { %1143 = vmatprep.subr.mxu0 %v474_v62  ;;  %1197 = vmatprep.subr.mxu1 %v482_v63 }
 0x155   :  { %1198 = vmatpush3.msra.mxu1 %v482_v63  ;;  %vm647_vm0 = vcmp.lt.s32.totalorder %v1633_v60, 16 }
 0x156   :  { %1199 = vmatprep.subr.mxu1 %v476_v1 }
 0x157   :  { %1144 = vmatpush3.xpose.msra.mxu0 %v474_v62  ;;  %1200 = vmatpush3.msra.mxu1 %v476_v1 }
 0x158   :  { %1145 = vmatprep.subr.mxu0 %v468_v2  ;;  %1201 = vmatprep.subr.mxu1 %v470_v3 }
 0x159   :  { %1202 = vmatpush3.msra.mxu1 %v470_v3 }
 0x15a   :  { %1203 = vmatprep.subr.mxu1 %v464_v4 }
 0x15b   :  { %1146 = vmatpush3.xpose.msra.mxu0 %v468_v2  ;;  %1204 = vmatpush3.msra.mxu1 %v464_v4 }
 0x15c   :  { %1147 = vmatprep.subr.mxu0 %v462_v6  ;;  %1205 = vmatprep.subr.mxu1 %v458_v5 }
 0x15d   :  { %1206 = vmatpush3.msra.mxu1 %v458_v5 }
 0x15e   :  { %1207 = vmatprep.subr.mxu1 %v452_v7 }
 0x15f   :  { %1148 = vmatpush3.xpose.msra.mxu0 %v462_v6  ;;  %1208 = vmatpush3.msra.mxu1 %v452_v7 }
 0x160   :  { %1149 = vmatprep.subr.mxu0 %v456_v9  ;;  %1209 = vmatprep.subr.mxu1 %v446_v8 }
 0x161   :  { %1210 = vmatpush3.msra.mxu1 %v446_v8 }
 0x162   :  { %1211 = vmatprep.subr.mxu1 %v440_v10 }
 0x163   :  { %1150 = vmatpush3.xpose.msra.mxu0 %v456_v9  ;;  %1212 = vmatpush3.msra.mxu1 %v440_v10 }
 0x164   :  { %1151 = vmatprep.subr.mxu0 %v450_v12  ;;  %1213 = vmatprep.subr.mxu1 %v434_v11 }
 0x165   :  { %1214 = vmatpush3.msra.mxu1 %v434_v11 }
 0x166   :  { %1215 = vmatprep.subr.mxu1 %v428_v13 }
 0x167   :  { %1152 = vmatpush3.xpose.msra.mxu0 %v450_v12  ;;  %1216 = vmatpush3.msra.mxu1 %v428_v13 }
 0x168   :  { %1153 = vmatprep.subr.mxu0 %v444_v15  ;;  %1217 = vmatprep.subr.mxu1 %v422_v14 }
 0x169   :  { %1218 = vmatpush3.msra.mxu1 %v422_v14 }
 0x16a   :  { %1219 = vmatprep.subr.mxu1 %v416_v16 }
 0x16b   :  { %1154 = vmatpush3.xpose.msra.mxu0 %v444_v15  ;;  %1220 = vmatpush3.msra.mxu1 %v416_v16 }
 0x16c   :  { %1155 = vmatprep.subr.mxu0 %v438_v27  ;;  %1221 = vmatprep.subr.mxu1 %v410_v17 }
 0x16d   :  { %1222 = vmatpush3.msra.mxu1 %v410_v17 }
 0x16e   :  { %1223 = vmatprep.subr.mxu1 %v404_v30 }
 0x16f   :  { %1156 = vmatpush3.xpose.msra.mxu0 %v438_v27  ;;  %1224 = vmatpush3.msra.mxu1 %v404_v30 }
 0x170   :  { %1157 = vmatprep.subr.mxu0 %v432_v31  ;;  %1225 = vmatprep.subr.mxu1 %v398_v29 }
 0x171   :  { %1226 = vmatpush3.msra.mxu1 %v398_v29 }
 0x172   :  { %1227 = vmatprep.subr.mxu1 %v392_v25 }
 0x173   :  { %1158 = vmatpush3.xpose.msra.mxu0 %v432_v31  ;;  %1228 = vmatpush3.msra.mxu1 %v392_v25 }
 0x174   :  { %1159 = vmatprep.subr.mxu0 %v426_v23 }
 0x177   :  { %1160 = vmatpush3.xpose.msra.mxu0 %v426_v23 }
 0x178   :  { %1161 = vmatprep.subr.mxu0 %v420_v21 }
 0x17b   :  { %1162 = vmatpush3.xpose.msra.mxu0 %v420_v21 }
 0x17c   :  { %1163 = vmatprep.subr.mxu0 %v414_v19 }
 0x17f   :  { %1164 = vmatpush3.xpose.msra.mxu0 %v414_v19 }
 0x180   :  { %1165 = vmatprep.subr.mxu0 %v408_v34 }
 0x183   :  { %1166 = vmatpush3.xpose.msra.mxu0 %v408_v34 }
 0x184   :  { %1167 = vmatprep.subr.mxu0 %v402_v39 }
 0x187   :  { %1168 = vmatpush3.xpose.msra.mxu0 %v402_v39 }
 0x188   :  { %1169 = vmatprep.subr.mxu0 %v396_v40 }
 0x18b   :  { %1170 = vmatpush3.xpose.msra.mxu0 %v396_v40 }
 0x18c   :  { %1171 = vmatprep.subr.mxu0 %v390_v41 }
 0x18f   :  { %1172 = vmatpush3.xpose.msra.mxu0 %v390_v41 }
 0x192   :  { %1174 = vmatmul.mubr.f32.vlgmr.msra.gmra.mxu0 %v1541_v28  ;;  %v244_v28 = vpop.f32.mrf.mxu0 }
 0x193   :  { %1176 = vmatprep.mubr.f32.mxu0 %v195_v42  ;;  %v245_v54 = vadd.f32 %v1536_v0, %v244_v28 }
 0x194   :  { %v1140_v52 = vpop.f32.mrf.mxu0 }
 0x195   :  { %v260_v58 = vadd.f32 %v1140_v52, %v1536_v0 }
 0x196   :  { %1177 = vmatmul.mubr.f32.gmra.mxu0 %v200_v20  ;;  %v254_v55 = vpop.f32.mrf.mxu0 }
 0x197   :  { %1179 = vmatprep.mubr.f32.mxu0 %v205_v22  ;;  %v255_v57 = vadd.f32 %v1536_v0, %v254_v55 }
 0x19a   :  { %1180 = vmatmul.mubr.f32.gmra.mxu0 %v210_v45 }
 0x19b   :  { %1182 = vmatprep.mubr.f32.mxu0 %v215_v18 }
 0x19e   :  { %1183 = vmatmul.mubr.f32.gmra.mxu0 %v220_v48 }
 0x19f   :  { %1185 = vmatprep.mubr.f32.mxu0 %v225_v49 }
 0x1a2   :  { %1186 = vmatmul.mubr.f32.gmra.mxu0 %v230_v50 }
 0x1a3   :  { %1188 = vmatprep.mubr.f32.mxu0 %v235_v51 }
 0x1a6   :  { %1189 = vmatmul.mubr.f32.gmra.mxu0 %v240_v53 }
 0x1a7   :  { %1191 = vmatprep.mubr.f32.mxu0 %v245_v54 }
 0x1aa   :  { %1192 = vmatmul.mubr.f32.gmra.mxu0 %v250_v56 }
 0x1ab   :  { %1194 = vmatprep.mubr.f32.mxu0 %v255_v57 }
 0x1ae   :  { %1195 = vmatmul.mubr.f32.gmra.mxu0 %v260_v58 }
 0x252   :  { %v1175_v59 = vpop.f32.mrf.mxu0 }
 0x253   :  { %v630_v1 = vmul.f32 0.17677669, %v1175_v59 }
 0x254   :  { %v550_v61 = vpop.f32.mrf.mxu0 }
 0x255   :  { %v629_v62 = vmul.f32 0.17677669, %v550_v61  ;;  %v649_v6 = vsel %vm647_vm0, %v630_v1, -1e+30 }
 0x256   :  { %v1178_v63 = vpop.f32.mrf.mxu0 }
 0x257   :  { %v648_v2 = vsel %vm647_vm0, %v629_v62, -1e+30  ;;  %v632_v5 = vmul.f32 0.17677669, %v1178_v63 }
 0x258   :  { %664 = vmax.xlane.f32.xlu0 %v648_v2  ;;  %v560_v3 = vpop.f32.mrf.mxu0 }
 0x259   :  { %v631_v4 = vmul.f32 0.17677669, %v560_v3  ;;  %v651_v11 = vsel %vm647_vm0, %v632_v5, -1e+30 }
 0x25a   :  { %v1181_v0 = vpop.f32.mrf.mxu0 }
 0x25b   :  { %v650_v46 = vsel %vm647_vm0, %v631_v4, -1e+30  ;;  %v634_v10 = vmul.f32 0.17677669, %v1181_v0 }
 0x25c   :  { %666 = vmax.xlane.f32.xlu0 %v649_v6  ;;  %668 = vmax.xlane.f32.xlu1 %v650_v46  ;;  %v570_v7 = vpop.f32.mrf.mxu0 }
 0x25d   :  { %v633_v8 = vmul.f32 0.17677669, %v570_v7  ;;  %v653_v17 = vsel %vm647_vm0, %v634_v10, -1e+30 }
 0x25e   :  { %v1184_v9 = vpop.f32.mrf.mxu0 }
 0x25f   :  { %v652_v12 = vsel %vm647_vm0, %v633_v8, -1e+30  ;;  %v636_v16 = vmul.f32 0.17677669, %v1184_v9 }
 0x260   :  { %670 = vmax.xlane.f32.xlu1 %v651_v11  ;;  %672 = vmax.xlane.f32.xlu0 %v652_v12  ;;  %v580_v13 = vpop.f32.mrf.mxu0 }
 0x261   :  { %v635_v14 = vmul.f32 0.17677669, %v580_v13  ;;  %v655_v23 = vsel %vm647_vm0, %v636_v16, -1e+30 }
 0x262   :  { %v1187_v15 = vpop.f32.mrf.mxu0 }
 0x263   :  { %v654_v27 = vsel %vm647_vm0, %v635_v14, -1e+30  ;;  %v638_v25 = vmul.f32 0.17677669, %v1187_v15 }
 0x264   :  { %674 = vmax.xlane.f32.xlu1 %v653_v17  ;;  %676 = vmax.xlane.f32.xlu0 %v654_v27  ;;  %v590_v30 = vpop.f32.mrf.mxu0 }
 0x265   :  { %v637_v29 = vmul.f32 0.17677669, %v590_v30  ;;  %v1656_v37 = vsel %vm647_vm0, %v638_v25, -1e+30 }
 0x266   :  { %v1190_v31 = vpop.f32.mrf.mxu0 }
 0x267   :  { %v656_v33 = vsel %vm647_vm0, %v637_v29, -1e+30  ;;  %v640_v19 = vmul.f32 0.17677669, %v1190_v31 }
 0x268   :  { %678 = vmax.xlane.f32.xlu1 %v655_v23  ;;  %680 = vmax.xlane.f32.xlu0 %v656_v33  ;;  %v600_v21 = vpop.f32.mrf.mxu0 }
 0x269   :  { %v639_v35 = vmul.f32 0.17677669, %v600_v21  ;;  %v1666_v26 = vsel %vm647_vm0, %v640_v19, -1e+30 }
 0x26a   :  { %v1193_v36 = vpop.f32.mrf.mxu0 }
 0x26b   :  { %v1660_v34 = vsel %vm647_vm0, %v639_v35, -1e+30  ;;  %v642_v40 = vmul.f32 0.17677669, %v1193_v36 }
 0x26c   :  { %682 = vmax.xlane.f32.xlu1 %v1656_v37  ;;  %684 = vmax.xlane.f32.xlu0 %v1660_v34  ;;  %v610_v38 = vpop.f32.mrf.mxu0 }
 0x26d   :  { %v641_v39 = vmul.f32 0.17677669, %v610_v38  ;;  %v1676_v22 = vsel %vm647_vm0, %v642_v40, -1e+30 }
 0x26e   :  { %v1196_v32 = vpop.f32.mrf.mxu0 }
 0x26f   :  { %v1670_v41 = vsel %vm647_vm0, %v641_v39, -1e+30  ;;  %v644_v43 = vmul.f32 0.17677669, %v1196_v32 }
 0x270   :  { %686 = vmax.xlane.f32.xlu1 %v1666_v26  ;;  %688 = vmax.xlane.f32.xlu0 %v1670_v41  ;;  %v620_v24 = vpop.f32.mrf.mxu0 }
 0x271   :  { %v643_v42 = vmul.f32 0.17677669, %v620_v24  ;;  %v1686_v44 = vsel %vm647_vm0, %v644_v43, -1e+30 }
 0x273   :  { %v1680_v20 = vsel %vm647_vm0, %v643_v42, -1e+30 }
 0x274   :  { %690 = vmax.xlane.f32.xlu1 %v1676_v22  ;;  %692 = vmax.xlane.f32.xlu0 %v1680_v20 }
 0x278   :  { %694 = vmax.xlane.f32.xlu1 %v1686_v44 }
 0x2e1   :  { %v665_v45 = vpop.xlane.xlu0 %664 }
 0x2e2   :  { %v696_v18 = vsub.f32 %v648_v2, %v665_v45 }
 0x2e4   :  { %v712_v47 = vmul.f32 1.442695, %v696_v18 }
 0x2e5   :  { %v667_v48 = vpop.xlane.xlu0 %666  ;;  %v669_v49 = vpop.xlane.xlu1 %668 }
 0x2e6   :  { %1263 = vpow2.f32 %v712_v47  ;;  %v697_v28 = vsub.f32 %v649_v6, %v667_v48  ;;  %v698_v50 = vsub.f32 %v650_v46, %v669_v49 }
 0x2e8   :  { %v714_v51 = vmul.f32 1.442695, %v697_v28  ;;  %v716_v52 = vmul.f32 1.442695, %v698_v50 }
 0x2e9   :  { %v671_v53 = vpop.xlane.xlu1 %670  ;;  %v673_v54 = vpop.xlane.xlu0 %672 }
 0x2ea   :  { %1265 = vpow2.f32 %v714_v51  ;;  %v699_v55 = vsub.f32 %v651_v11, %v671_v53  ;;  %v700_v56 = vsub.f32 %v652_v12, %v673_v54 }
 0x2eb   :  { %1267 = vpow2.f32 %v716_v52 }
 0x2ec   :  { %v718_v57 = vmul.f32 1.442695, %v699_v55  ;;  %v720_v58 = vmul.f32 1.442695, %v700_v56 }
 0x2ed   :  { %v675_v59 = vpop.xlane.xlu1 %674  ;;  %v677_v60 = vpop.xlane.xlu0 %676 }
 0x2ee   :  { %1269 = vpow2.f32 %v718_v57  ;;  %v701_v61 = vsub.f32 %v653_v17, %v675_v59  ;;  %v702_v62 = vsub.f32 %v654_v27, %v677_v60 }
 0x2ef   :  { %1271 = vpow2.f32 %v720_v58 }
 0x2f0   :  { %v722_v63 = vmul.f32 1.442695, %v701_v61  ;;  %v724_v1 = vmul.f32 1.442695, %v702_v62 }
 0x2f1   :  { %v679_v2 = vpop.xlane.xlu1 %678  ;;  %v681_v3 = vpop.xlane.xlu0 %680 }
 0x2f2   :  { %1273 = vpow2.f32 %v722_v63  ;;  %v703_v4 = vsub.f32 %v655_v23, %v679_v2  ;;  %v704_v0 = vsub.f32 %v656_v33, %v681_v3 }
 0x2f3   :  { %v1264_v5 = vpop.eup %1263  ;;  %1275 = vpow2.f32 %v724_v1 }
 0x2f4   :  { %v726_v6 = vmul.f32 1.442695, %v703_v4  ;;  %v728_v46 = vmul.f32 1.442695, %v704_v0  ;;  %1229 = vmatprep.mubr.f32.mxu1 %v1264_v5  ;;  %744 = vadd.xlane.f32.xlu0 %v1264_v5 }
 0x2f5   :  { %v683_v7 = vpop.xlane.xlu1 %682  ;;  %v685_v8 = vpop.xlane.xlu0 %684 }
 0x2f6   :  { %1277 = vpow2.f32 %v726_v6  ;;  %v705_v9 = vsub.f32 %v1656_v37, %v683_v7  ;;  %v706_v10 = vsub.f32 %v1660_v34, %v685_v8 }
 0x2f7   :  { %v1266_v11 = vpop.eup %1265  ;;  %1279 = vpow2.f32 %v728_v46 }
 0x2f8   :  { %v1268_v12 = vpop.eup %1267  ;;  %v730_v13 = vmul.f32 1.442695, %v705_v9  ;;  %v732_v14 = vmul.f32 1.442695, %v706_v10  ;;  %1230 = vmatmul.mubr.f32.vlgmr.msra.gmra.mxu1 %v1266_v11  ;;  %746 = vadd.xlane.f32.xlu1 %v1266_v11 }
 0x2f9   :  { %748 = vadd.xlane.f32.xlu0 %v1268_v12  ;;  %1232 = vmatprep.mubr.f32.mxu1 %v1268_v12  ;;  %v687_v15 = vpop.xlane.xlu1 %686  ;;  %v689_v16 = vpop.xlane.xlu0 %688 }
 0x2fa   :  { %1281 = vpow2.f32 %v730_v13  ;;  %v707_v17 = vsub.f32 %v1666_v26, %v687_v15  ;;  %v708_v27 = vsub.f32 %v1670_v41, %v689_v16 }
 0x2fb   :  { %v1270_v30 = vpop.eup %1269  ;;  %1283 = vpow2.f32 %v732_v14 }
 0x2fc   :  { %v1272_v29 = vpop.eup %1271  ;;  %v734_v31 = vmul.f32 1.442695, %v707_v17  ;;  %v736_v25 = vmul.f32 1.442695, %v708_v27  ;;  %1233 = vmatmul.mubr.f32.gmra.mxu1 %v1270_v30  ;;  %750 = vadd.xlane.f32.xlu1 %v1270_v30 }
 0x2fd   :  { %752 = vadd.xlane.f32.xlu0 %v1272_v29  ;;  %1235 = vmatprep.mubr.f32.mxu1 %v1272_v29  ;;  %v691_v23 = vpop.xlane.xlu1 %690  ;;  %v693_v33 = vpop.xlane.xlu0 %692 }
 0x2fe   :  { %1285 = vpow2.f32 %v734_v31  ;;  %v709_v21 = vsub.f32 %v1676_v22, %v691_v23  ;;  %v710_v35 = vsub.f32 %v1680_v20, %v693_v33 }
 0x2ff   :  { %v1274_v36 = vpop.eup %1273  ;;  %1287 = vpow2.f32 %v736_v25 }
 0x300   :  { %v1276_v19 = vpop.eup %1275  ;;  %v738_v37 = vmul.f32 1.442695, %v709_v21  ;;  %v740_v34 = vmul.f32 1.442695, %v710_v35  ;;  %1236 = vmatmul.mubr.f32.gmra.mxu1 %v1274_v36  ;;  %754 = vadd.xlane.f32.xlu1 %v1274_v36 }
 0x301   :  { %756 = vadd.xlane.f32.xlu0 %v1276_v19  ;;  %1238 = vmatprep.mubr.f32.mxu1 %v1276_v19  ;;  %v695_v38 = vpop.xlane.xlu1 %694 }
 0x302   :  { %1289 = vpow2.f32 %v738_v37  ;;  %v711_v39 = vsub.f32 %v1686_v44, %v695_v38 }
 0x303   :  { %v1278_v32 = vpop.eup %1277  ;;  %1291 = vpow2.f32 %v740_v34 }
 0x304   :  { %v1280_v40 = vpop.eup %1279  ;;  %v742_v26 = vmul.f32 1.442695, %v711_v39  ;;  %1239 = vmatmul.mubr.f32.gmra.mxu1 %v1278_v32  ;;  %758 = vadd.xlane.f32.xlu1 %v1278_v32 }
 0x305   :  { %760 = vadd.xlane.f32.xlu0 %v1280_v40  ;;  %1241 = vmatprep.mubr.f32.mxu1 %v1280_v40 }
 0x306   :  { %1293 = vpow2.f32 %v742_v26 }
 0x307   :  { %v1282_v41 = vpop.eup %1281 }
 0x308   :  { %v1284_v24 = vpop.eup %1283  ;;  %1242 = vmatmul.mubr.f32.gmra.mxu1 %v1282_v41  ;;  %762 = vadd.xlane.f32.xlu1 %v1282_v41 }
 0x309   :  { %764 = vadd.xlane.f32.xlu0 %v1284_v24  ;;  %1244 = vmatprep.mubr.f32.mxu1 %v1284_v24 }
 0x30b   :  { %v1286_v42 = vpop.eup %1285 }
 0x30c   :  { %v1288_v43 = vpop.eup %1287  ;;  %1245 = vmatmul.mubr.f32.gmra.mxu1 %v1286_v42  ;;  %766 = vadd.xlane.f32.xlu1 %v1286_v42 }
 0x30d   :  { %768 = vadd.xlane.f32.xlu0 %v1288_v43  ;;  %1247 = vmatprep.mubr.f32.mxu1 %v1288_v43 }
 0x30f   :  { %v1290_v22 = vpop.eup %1289 }
 0x310   :  { %v1292_v20 = vpop.eup %1291  ;;  %1248 = vmatmul.mubr.f32.gmra.mxu1 %v1290_v22  ;;  %770 = vadd.xlane.f32.xlu1 %v1290_v22 }
 0x311   :  { %772 = vadd.xlane.f32.xlu0 %v1292_v20  ;;  %1250 = vmatprep.mubr.f32.mxu1 %v1292_v20 }
 0x313   :  { %v1294_v44 = vpop.eup %1293 }
 0x314   :  { %774 = vadd.xlane.f32.xlu1 %v1294_v44  ;;  %1251 = vmatmul.mubr.f32.gmra.mxu1 %v1294_v44 }
 0x37d   :  { %v745_v18 = vpop.xlane.xlu0 %744 }
 0x381   :  { %v747_v45 = vpop.xlane.xlu1 %746 }
 0x382   :  { %v749_v48 = vpop.xlane.xlu0 %748  ;;  %1295 = vrcp.f32 %v747_v45 }
 0x383   :  { %1297 = vrcp.f32 %v745_v18 }
 0x385   :  { %v751_v47 = vpop.xlane.xlu1 %750 }
 0x386   :  { %v753_v28 = vpop.xlane.xlu0 %752  ;;  %1299 = vrcp.f32 %v751_v47 }
 0x387   :  { %1301 = vrcp.f32 %v749_v48 }
 0x389   :  { %v755_v49 = vpop.xlane.xlu1 %754 }
 0x38a   :  { %v757_v51 = vpop.xlane.xlu0 %756  ;;  %1303 = vrcp.f32 %v755_v49 }
 0x38b   :  { %1305 = vrcp.f32 %v753_v28 }
 0x38d   :  { %v759_v50 = vpop.xlane.xlu1 %758 }
 0x38e   :  { %v761_v53 = vpop.xlane.xlu0 %760  ;;  %1307 = vrcp.f32 %v759_v50 }
 0x38f   :  { %v1296_v54 = vpop.eup %1295  ;;  %1309 = vrcp.f32 %v757_v51 }
 0x390   :  { %v1298_v58 = vpop.eup %1297 }
 0x391   :  { %v763_v52 = vpop.xlane.xlu1 %762 }
 0x392   :  { %v765_v59 = vpop.xlane.xlu0 %764  ;;  %1311 = vrcp.f32 %v763_v52 }
 0x393   :  { %v1300_v62 = vpop.eup %1299  ;;  %1313 = vrcp.f32 %v761_v53 }
 0x394   :  { %v1302_v2 = vpop.eup %1301 }
 0x395   :  { %v767_v55 = vpop.xlane.xlu1 %766 }
 0x396   :  { %1315 = vrcp.f32 %v767_v55  ;;  %v769_v6 = vpop.xlane.xlu0 %768 }
 0x397   :  { %v1304_v5 = vpop.eup %1303  ;;  %1317 = vrcp.f32 %v765_v59 }
 0x398   :  { %v1306_v8 = vpop.eup %1305 }
 0x399   :  { %v771_v3 = vpop.xlane.xlu1 %770 }
 0x39a   :  { %1319 = vrcp.f32 %v771_v3  ;;  %v773_v16 = vpop.xlane.xlu0 %772 }
 0x39b   :  { %v1308_v11 = vpop.eup %1307  ;;  %1321 = vrcp.f32 %v769_v6 }
 0x39c   :  { %v1310_v15 = vpop.eup %1309 }
 0x39d   :  { %v775_v12 = vpop.xlane.xlu1 %774 }
 0x39e   :  { %1323 = vrcp.f32 %v775_v12 }
 0x39f   :  { %v1312_v30 = vpop.eup %1311  ;;  %1325 = vrcp.f32 %v773_v16 }
 0x3a0   :  { %v1314_v25 = vpop.eup %1313 }
 0x3a3   :  { %v1316_v21 = vpop.eup %1315 }
 0x3a4   :  { %v1318_v19 = vpop.eup %1317 }
 0x3a7   :  { %v1320_v38 = vpop.eup %1319 }
 0x3a8   :  { %v1322_v40 = vpop.eup %1321 }
 0x3ab   :  { %v1324_v24 = vpop.eup %1323 }
 0x3ac   :  { %v1326_v22 = vpop.eup %1325 }
 0x3b8   :  { %v1231_v56 = vpop.f32.mrf.mxu1 }
 0x3b9   :  { %v938_v57 = vmul.f32 %v1296_v54, %v1231_v56 }
 0x3ba   :  { %v842_v60 = vpop.f32.mrf.mxu1 }
 0x3bb   :  { %954 = vst [vmem:[#allocation10 + $0x8] sm:$0xff] %v938_v57  ;;  %v937_v61 = vmul.f32 %v1298_v58, %v842_v60 }
 0x3bc   :  { %v1234_v63 = vpop.f32.mrf.mxu1 }
 0x3bd   :  { %953 = vst [vmem:[#allocation10] sm:$0xff] %v937_v61  ;;  %v940_v1 = vmul.f32 %v1300_v62, %v1234_v63 }
 0x3be   :  { %v852_v4 = vpop.f32.mrf.mxu1 }
 0x3bf   :  { %956 = vst [vmem:[#allocation10 + $0x18] sm:$0xff] %v940_v1  ;;  %v939_v0 = vmul.f32 %v1302_v2, %v852_v4 }
 0x3c0   :  { %v1237_v46 = vpop.f32.mrf.mxu1 }
 0x3c1   :  { %955 = vst [vmem:[#allocation10 + $0x10] sm:$0xff] %v939_v0  ;;  %v942_v7 = vmul.f32 %v1304_v5, %v1237_v46 }
 0x3c2   :  { %v862_v9 = vpop.f32.mrf.mxu1 }
 0x3c3   :  { %958 = vst [vmem:[#allocation10 + $0x28] sm:$0xff] %v942_v7  ;;  %v941_v10 = vmul.f32 %v1306_v8, %v862_v9 }
 0x3c4   :  { %v1240_v13 = vpop.f32.mrf.mxu1 }
 0x3c5   :  { %957 = vst [vmem:[#allocation10 + $0x20] sm:$0xff] %v941_v10  ;;  %v944_v14 = vmul.f32 %v1308_v11, %v1240_v13 }
 0x3c6   :  { %v872_v17 = vpop.f32.mrf.mxu1 }
 0x3c7   :  { %960 = vst [vmem:[#allocation10 + $0x38] sm:$0xff] %v944_v14  ;;  %v943_v27 = vmul.f32 %v1310_v15, %v872_v17 }
 0x3c8   :  { %v1243_v29 = vpop.f32.mrf.mxu1 }
 0x3c9   :  { %959 = vst [vmem:[#allocation10 + $0x30] sm:$0xff] %v943_v27  ;;  %v946_v31 = vmul.f32 %v1312_v30, %v1243_v29 }
 0x3ca   :  { %v882_v23 = vpop.f32.mrf.mxu1 }
 0x3cb   :  { %962 = vst [vmem:[#allocation10 + $0x48] sm:$0xff] %v946_v31  ;;  %v945_v33 = vmul.f32 %v1314_v25, %v882_v23 }
 0x3cc   :  { %v1246_v35 = vpop.f32.mrf.mxu1 }
 0x3cd   :  { %961 = vst [vmem:[#allocation10 + $0x40] sm:$0xff] %v945_v33  ;;  %v948_v36 = vmul.f32 %v1316_v21, %v1246_v35 }
 0x3ce   :  { %v892_v37 = vpop.f32.mrf.mxu1 }
 0x3cf   :  { %964 = vst [vmem:[#allocation10 + $0x58] sm:$0xff] %v948_v36  ;;  %v947_v34 = vmul.f32 %v1318_v19, %v892_v37 }
 0x3d0   :  { %v1249_v39 = vpop.f32.mrf.mxu1 }
 0x3d1   :  { %963 = vst [vmem:[#allocation10 + $0x50] sm:$0xff] %v947_v34  ;;  %v950_v32 = vmul.f32 %v1320_v38, %v1249_v39 }
 0x3d2   :  { %v902_v26 = vpop.f32.mrf.mxu1 }
 0x3d3   :  { %966 = vst [vmem:[#allocation10 + $0x68] sm:$0xff] %v950_v32  ;;  %v949_v41 = vmul.f32 %v1322_v40, %v902_v26 }
 0x3d4   :  { %v1252_v42 = vpop.f32.mrf.mxu1 }
 0x3d5   :  { %965 = vst [vmem:[#allocation10 + $0x60] sm:$0xff] %v949_v41  ;;  %v952_v43 = vmul.f32 %v1324_v24, %v1252_v42 }
 0x3d6   :  { %v912_v20 = vpop.f32.mrf.mxu1 }
 0x3d7   :  { %968 = vst [vmem:[#allocation10 + $0x78] sm:$0xff] %v952_v43  ;;  %v951_v44 = vmul.f32 %v1326_v22, %v912_v20 }
 0x3d9   :  { %967 = vst [vmem:[#allocation10 + $0x70] sm:$0xff] %v951_v44 }
 0x3da   :  { %1418 = shalt.err (!%p1415_p10)
}
 0x3db   :  { %980 = dma.vmem_to_hbm [thread:$0]  %s975_s20, 2048, %s1708_s6, [#allocation4], %s1437_s26, %s1437_s26, %s1438_s27  }
 0x3dc   :  { %1433 = dma.done.wait [#allocation4], 2048  }
 0x3dd   :  { %1434 = vsyncadd [#allocation4], 4294965248 }
 0x3de   :  { %984 = vsyncpa [#allocation3], 1 }
 0x3df   :  { %985 = vsyncpa [#allocation6], 1 }
 0x3e0   :  { %986 = vsyncpa [#allocation9], 1 }
 0x3e1   :  { %987 = vsyncpa [#allocation4], 1 }

</bundles_post_ra>
